<compile_context>
chip_gen: v7x
topology: tpu7x:2x2x1
jax: 0.10.0
libtpu: 0.0.40
codegen_flags: <defaults>
</compile_context>

<pallas_src>
import functools

import jax
import jax.numpy as jnp
from jax.experimental import pallas as pl
from jax.experimental.pallas import tpu as pltpu


def _round_up(x, m):
    return ((x + m - 1) // m) * m


def _vmem_footprint(rows, T, rT, itemsizes):
    """Padded VMEM bytes for one pipelined step (2 buffers/stream + scratch)."""
    T_pad = _round_up(T, 128)
    rT_pad = _round_up(rT, 128)
    total = 0
    for isz, tpad in ((itemsizes[0], T_pad), (itemsizes[1], T_pad),
                      (itemsizes[2], rT_pad)):
        sub = max(8, 32 // isz)                      # sublane tile for this dtype
        total += 2 * _round_up(rows, sub) * tpad * isz   # double-buffered stream
    total += 2 * _round_up(rows, 8) * T_pad * 4          # f32 accumulators
    total += 2 * 16 * 128 * 4                            # output tile (2 buffers)
    return total


def _choose_block_rows(B, T, rT, itemsizes, budget):
    sub_min = max(8, 32 // min(itemsizes))
    if _vmem_footprint(B, T, rT, itemsizes) <= budget or B <= sub_min:
        return B                                     # single block (full dims)
    per_chunk = _vmem_footprint(sub_min, T, rT, itemsizes)
    k = max(1, budget // per_chunk)
    largest_tiled = max(sub_min, ((B - 1) // sub_min) * sub_min)
    return int(min(k * sub_min, largest_tiled))


def _reward_criterion_kernel(inp_ref, seq_ref, rew_ref, out_ref,
                             acc_num_ref, acc_den_ref, *,
                             total_rows, block_rows, blocks_per_group,
                             need_row_mask):
    g = pl.program_id(0)          # "parallel" row-group axis (megacore)
    i = pl.program_id(1)          # "arbitrary" reduction axis within the group

    @pl.when(i == 0)
    def _init():
        acc_num_ref[...] = jnp.zeros_like(acc_num_ref)
        acc_den_ref[...] = jnp.zeros_like(acc_den_ref)

    inp = inp_ref[...].astype(jnp.float32)            # (bR, T)
    rew = rew_ref[...].astype(jnp.float32)            # (bR, T) or (bR, 1)
    seq = seq_ref[...]                                 # (bR, T) integer
    bR, T = inp.shape

    # mask[:, 0] = 1 ; mask[:, t] = (seq[:, t-1] > 0) for t >= 1.
    # Block spans the full T dim so the in-row roll is exact; the wrapped
    # element lands in column 0 where the col==0 branch wins anyway.
    seq_shift = pltpu.roll(seq, shift=1, axis=1)
    col = jax.lax.broadcasted_iota(jnp.int32, (bR, T), 1)
    keep = jnp.logical_or(col == 0, seq_shift > 0)

    if need_row_mask:
        # Ragged last block and/or duplicated (clamped) iterations when the
        # block count does not divide evenly among the groups: zero them out.
        start = (g * blocks_per_group + i) * block_rows
        row = start + jax.lax.broadcasted_iota(jnp.int32, (bR, T), 0)
        keep = jnp.logical_and(keep, row < total_rows)

    # Pure VPU per step: masked product + mask accumulated into VMEM scratch.
    acc_num_ref[...] += jnp.where(keep, inp * rew, 0.0)
    acc_den_ref[...] += keep.astype(jnp.float32)

    @pl.when(i == pl.num_programs(1) - 1)
    def _finalize():
        num = jnp.sum(acc_num_ref[...])
        den = jnp.sum(acc_den_ref[...])
        # Lane-dense (1,16,128) partial tile: sublanes 0..7 carry num, 8..15 den.
        sub = jax.lax.broadcasted_iota(jnp.int32, (1, 16, 128), 1)
        out_ref[...] = jnp.where(sub < 8, num, den)


def reward_criterion(inp, seq, reward, *, block_rows=None,
                     vmem_budget_bytes=24 * 1024 * 1024):
    """Pallas implementation of RewardCriterion.forward.  Returns a scalar."""
    B, T = inp.shape
    assert seq.shape == (B, T)

    # Per-sequence reward ((B,) or (B,1)) is supported and streams fewer bytes.
    reward2d = reward.reshape(B, 1) if reward.ndim == 1 else reward
    rT = reward2d.shape[1]
    assert reward2d.shape in ((B, 1), (B, T))

    itemsizes = (jnp.dtype(inp.dtype).itemsize,
                 jnp.dtype(seq.dtype).itemsize,
                 jnp.dtype(reward2d.dtype).itemsize)
    sub_min = max(8, 32 // min(itemsizes))

    if block_rows is None:
        block_rows = _choose_block_rows(B, T, rT, itemsizes, vmem_budget_bytes)
    block_rows = int(block_rows)
    if block_rows >= B:
        block_rows = B                                     # full-dim block
    else:
        block_rows = min(B, _round_up(max(block_rows, sub_min), sub_min))
        if block_rows >= B:
            block_rows = B

    num_blocks = pl.cdiv(B, block_rows)
    num_groups = 2 if num_blocks >= 2 else 1               # both TCs on v7x
    blocks_per_group = pl.cdiv(num_blocks, num_groups)
    need_row_mask = (B % block_rows != 0) or (num_blocks % num_groups != 0)

    footprint = _vmem_footprint(block_rows, T, rT, itemsizes)
    vmem_limit = int(min(max(footprint + (8 << 20), 16 << 20), 56 << 20))

    if num_blocks % num_groups != 0:
        # Clamp duplicated trailing iterations onto the last valid block; their
        # contribution is zeroed by the row-validity mask in the kernel.
        def block_index(g, i):
            return jnp.minimum(g * blocks_per_group + i, num_blocks - 1)
    else:
        def block_index(g, i):
            return g * blocks_per_group + i

    kernel = functools.partial(
        _reward_criterion_kernel,
        total_rows=B, block_rows=block_rows,
        blocks_per_group=blocks_per_group, need_row_mask=need_row_mask)

    bytes_in = B * T * (itemsizes[0] + itemsizes[1]) + B * rT * itemsizes[2]
    bytes_out = num_groups * 16 * 128 * 4

    partials = pl.pallas_call(
        kernel,
        out_shape=jax.ShapeDtypeStruct((num_groups, 16, 128), jnp.float32),
        grid_spec=pltpu.PrefetchScalarGridSpec(
            num_scalar_prefetch=0,
            grid=(num_groups, blocks_per_group),
            in_specs=[
                pl.BlockSpec((block_rows, T), lambda g, i: (block_index(g, i), 0)),
                pl.BlockSpec((block_rows, T), lambda g, i: (block_index(g, i), 0)),
                pl.BlockSpec((block_rows, rT), lambda g, i: (block_index(g, i), 0)),
            ],
            out_specs=pl.BlockSpec((1, 16, 128), lambda g, i: (g, 0, 0)),
            scratch_shapes=[pltpu.VMEM((block_rows, T), jnp.float32),
                            pltpu.VMEM((block_rows, T), jnp.float32)],
        ),
        compiler_params=pltpu.CompilerParams(
            dimension_semantics=("parallel", "arbitrary"),
            vmem_limit_bytes=vmem_limit,
        ),
        cost_estimate=pl.CostEstimate(
            flops=5 * B * T, transcendentals=0,
            bytes_accessed=bytes_in + bytes_out),
    )(inp, seq, reward2d)

    # Tiny cross-group combine + hoisted negation + final divide.
    num = jnp.sum(partials[:, 0, 0])
    den = jnp.sum(partials[:, 8, 0])
    return -num / den


def _reference(inp, seq, reward):
    # Pure-JAX reference mirroring the PyTorch module.
    inp = inp.astype(jnp.float32)
    rew = jnp.broadcast_to(reward.reshape(inp.shape[0], -1).astype(jnp.float32),
                           inp.shape)
    mask = (seq > 0).astype(jnp.float32)
    mask = jnp.concatenate(
        [jnp.ones((mask.shape[0], 1), jnp.float32), mask[:, :-1]], axis=1)
    out = -inp * rew * mask
    return jnp.sum(out) / jnp.sum(mask)


if __name__ == "__main__":
    key = jax.random.PRNGKey(0)

    # --- Test 1: small spec-like shapes (single block, full dims) ---
    k1, k2, k3, key = jax.random.split(key, 4)
    B, T = 2, 8
    inp = -jnp.abs(jax.random.normal(k1, (B, T), dtype=jnp.float32))
    seq = jax.random.randint(k2, (B, T), 0, 5).astype(jnp.int32)
    seq = seq.at[:, -2:].set(0)
    reward = jax.random.normal(k3, (B, T), dtype=jnp.float32)

    out = jax.block_until_ready(reward_criterion(inp, seq, reward))
    ref = _reference(inp, seq, reward)
    assert jnp.allclose(out, ref, rtol=1e-4, atol=1e-4), (out, ref)

    # --- Test 2: tiled path (grid>1, both groups, ragged + clamped block) ---
    k1, k2, k3, key = jax.random.split(key, 4)
    B2, T2 = 20, 24
    inp2 = -jnp.abs(jax.random.normal(k1, (B2, T2), dtype=jnp.float32))
    seq2 = jax.random.randint(k2, (B2, T2), 0, 3).astype(jnp.int32)
    rew2 = jax.random.normal(k3, (B2, T2), dtype=jnp.float32)

    out2 = jax.block_until_ready(reward_criterion(inp2, seq2, rew2, block_rows=8))
    ref2 = _reference(inp2, seq2, rew2)
    assert jnp.allclose(out2, ref2, rtol=1e-4, atol=1e-4), (out2, ref2)

    # --- Test 3: bf16 input + per-sequence reward (B,) + 16-row bf16 tiles ---
    k1, k2, k3, key = jax.random.split(key, 4)
    B3, T3 = 32, 16
    inp3 = -jnp.abs(jax.random.normal(k1, (B3, T3), dtype=jnp.float32)).astype(jnp.bfloat16)
    seq3 = jax.random.randint(k2, (B3, T3), 0, 3).astype(jnp.int32)
    rew3 = jax.random.normal(k3, (B3,), dtype=jnp.float32)

    out3 = jax.block_until_ready(reward_criterion(inp3, seq3, rew3, block_rows=16))
    ref3 = _reference(inp3, seq3, rew3)
    assert jnp.allclose(out3, ref3, rtol=1e-4, atol=1e-4), (out3, ref3)

    print("KERNEL_OK")
</pallas_src>

<mosaic_0001>
module attributes {stable_mosaic.version = 11 : i64} {
  func.func @_reward_criterion_kernel(%arg0: i32, %arg1: i32, %arg2: memref<2x8xf32, #tpu.memory_space<vmem>>, %arg3: memref<2x8xi32, #tpu.memory_space<vmem>>, %arg4: memref<2x8xf32, #tpu.memory_space<vmem>>, %arg5: memref<1x16x128xf32, #tpu.memory_space<vmem>>, %arg6: memref<2x8xf32, #tpu.memory_space<vmem>>, %arg7: memref<2x8xf32, #tpu.memory_space<vmem>>) attributes {dimension_semantics = [#tpu.dimension_semantics<parallel>, #tpu.dimension_semantics<arbitrary>], iteration_bounds = array<i64: 1, 1>, scalar_prefetch = 0 : i64, scratch_operands = 2 : i64, tpu.core_type = #tpu.core_type<tc>, window_params = [{transform_indices = @transform_0, window_bounds = array<i64: 2, 8>}, {transform_indices = @transform_1, window_bounds = array<i64: 2, 8>}, {transform_indices = @transform_2, window_bounds = array<i64: 2, 8>}, {transform_indices = @transform_3, window_bounds = array<i64: 1, 16, 128>}]} {
    %c0_i32 = arith.constant 0 : i32
    %0 = arith.cmpi eq, %arg1, %c0_i32 : i32
    %1 = arith.extui %0 : i1 to i32
    %c0_i32_0 = arith.constant 0 : i32
    %2 = arith.cmpi ne, %1, %c0_i32_0 : i32
    scf.if %2 {
      %cst_18 = arith.constant 0.000000e+00 : f32
      %27 = vector.broadcast %cst_18 : f32 to vector<2x8xf32>
      %c0_19 = arith.constant 0 : index
      %c0_20 = arith.constant 0 : index
      %28 = vector.load %arg6[%c0_19, %c0_20] : memref<2x8xf32, #tpu.memory_space<vmem>>, vector<2x8xf32>
      tpu.vector_store %arg6[%c0_19, %c0_20], %27 {strides = array<i32>} : memref<2x8xf32, #tpu.memory_space<vmem>>, vector<2x8xf32>,
      %cst_21 = arith.constant 0.000000e+00 : f32
      %29 = vector.broadcast %cst_21 : f32 to vector<2x8xf32>
      %c0_22 = arith.constant 0 : index
      %c0_23 = arith.constant 0 : index
      %30 = vector.load %arg7[%c0_22, %c0_23] : memref<2x8xf32, #tpu.memory_space<vmem>>, vector<2x8xf32>
      tpu.vector_store %arg7[%c0_22, %c0_23], %29 {strides = array<i32>} : memref<2x8xf32, #tpu.memory_space<vmem>>, vector<2x8xf32>,
    } else {
    }
    %c0 = arith.constant 0 : index
    %c0_1 = arith.constant 0 : index
    %3 = vector.load %arg2[%c0, %c0_1] : memref<2x8xf32, #tpu.memory_space<vmem>>, vector<2x8xf32>
    %c0_2 = arith.constant 0 : index
    %c0_3 = arith.constant 0 : index
    %4 = vector.load %arg4[%c0_2, %c0_3] : memref<2x8xf32, #tpu.memory_space<vmem>>, vector<2x8xf32>
    %c0_4 = arith.constant 0 : index
    %c0_5 = arith.constant 0 : index
    %5 = vector.load %arg3[%c0_4, %c0_5] : memref<2x8xi32, #tpu.memory_space<vmem>>, vector<2x8xi32>
    %c1_i32 = arith.constant 1 : i32
    %6 = tpu.dynamic_rotate %5 by %c1_i32 dim 1 : vector<2x8xi32>, i32 -> vector<2x8xi32>
    %7 = tpu.iota {dimensions = array<i32: 1>} : vector<2x8xi32>
    %c0_i32_6 = arith.constant 0 : i32
    %8 = vector.broadcast %c0_i32_6 : i32 to vector<2x8xi32>
    %9 = arith.cmpi eq, %7, %8 : vector<2x8xi32>
    %c0_i32_7 = arith.constant 0 : i32
    %10 = vector.broadcast %c0_i32_7 : i32 to vector<2x8xi32>
    %11 = arith.cmpi sgt, %6, %10 : vector<2x8xi32>
    %12 = arith.ori %9, %11 : vector<2x8xi1>
    %c0_8 = arith.constant 0 : index
    %c0_9 = arith.constant 0 : index
    %13 = vector.load %arg6[%c0_8, %c0_9] : memref<2x8xf32, #tpu.memory_space<vmem>>, vector<2x8xf32>
    %14 = arith.mulf %3, %4 : vector<2x8xf32>
    %cst = arith.constant 0.000000e+00 : f32
    %15 = vector.broadcast %cst : f32 to vector<2x8xf32>
    %16 = arith.select %12, %14, %15 : vector<2x8xi1>, vector<2x8xf32>
    %17 = arith.addf %13, %16 : vector<2x8xf32>
    %c0_10 = arith.constant 0 : index
    %c0_11 = arith.constant 0 : index
    %18 = vector.load %arg6[%c0_10, %c0_11] : memref<2x8xf32, #tpu.memory_space<vmem>>, vector<2x8xf32>
    tpu.vector_store %arg6[%c0_10, %c0_11], %17 {strides = array<i32>} : memref<2x8xf32, #tpu.memory_space<vmem>>, vector<2x8xf32>,
    %c0_12 = arith.constant 0 : index
    %c0_13 = arith.constant 0 : index
    %19 = vector.load %arg7[%c0_12, %c0_13] : memref<2x8xf32, #tpu.memory_space<vmem>>, vector<2x8xf32>
    %20 = arith.extui %12 : vector<2x8xi1> to vector<2x8xi32>
    %21 = arith.sitofp %20 : vector<2x8xi32> to vector<2x8xf32>
    %22 = arith.addf %19, %21 : vector<2x8xf32>
    %c0_14 = arith.constant 0 : index
    %c0_15 = arith.constant 0 : index
    %23 = vector.load %arg7[%c0_14, %c0_15] : memref<2x8xf32, #tpu.memory_space<vmem>>, vector<2x8xf32>
    tpu.vector_store %arg7[%c0_14, %c0_15], %22 {strides = array<i32>} : memref<2x8xf32, #tpu.memory_space<vmem>>, vector<2x8xf32>,
    %c0_i32_16 = arith.constant 0 : i32
    %24 = arith.cmpi eq, %arg1, %c0_i32_16 : i32
    %25 = arith.extui %24 : i1 to i32
    %c0_i32_17 = arith.constant 0 : i32
    %26 = arith.cmpi ne, %25, %c0_i32_17 : i32
    scf.if %26 {
      %c0_18 = arith.constant 0 : index
      %c0_19 = arith.constant 0 : index
      %27 = vector.load %arg6[%c0_18, %c0_19] : memref<2x8xf32, #tpu.memory_space<vmem>>, vector<2x8xf32>
      %28 = vector.shape_cast %27 : vector<2x8xf32> to vector<1x2x8xf32>
      %cst_20 = arith.constant dense<0.000000e+00> : vector<1xf32>
      %29 = vector.multi_reduction <add>, %28, %cst_20 [1, 2] : vector<1x2x8xf32> to vector<1xf32>
      %30 = vector.shape_cast %29 : vector<1xf32> to vector<1x1x1xf32>
      %31 = vector.extract %30[0, 0, 0] : f32 from vector<1x1x1xf32>
      %c0_21 = arith.constant 0 : index
      %c0_22 = arith.constant 0 : index
      %32 = vector.load %arg7[%c0_21, %c0_22] : memref<2x8xf32, #tpu.memory_space<vmem>>, vector<2x8xf32>
      %33 = vector.shape_cast %32 : vector<2x8xf32> to vector<1x2x8xf32>
      %cst_23 = arith.constant dense<0.000000e+00> : vector<1xf32>
      %34 = vector.multi_reduction <add>, %33, %cst_23 [1, 2] : vector<1x2x8xf32> to vector<1xf32>
      %35 = vector.shape_cast %34 : vector<1xf32> to vector<1x1x1xf32>
      %36 = vector.extract %35[0, 0, 0] : f32 from vector<1x1x1xf32>
      %37 = tpu.iota {dimensions = array<i32: 1>} : vector<1x16x128xi32>
      %c8_i32 = arith.constant 8 : i32
      %38 = vector.broadcast %c8_i32 : i32 to vector<1x16x128xi32>
      %39 = arith.cmpi slt, %37, %38 : vector<1x16x128xi32>
      %40 = vector.broadcast %31 : f32 to vector<1x16x128xf32>
      %41 = vector.broadcast %36 : f32 to vector<1x16x128xf32>
      %42 = arith.select %39, %40, %41 : vector<1x16x128xi1>, vector<1x16x128xf32>
      %c0_24 = arith.constant 0 : index
      %c0_25 = arith.constant 0 : index
      %c0_26 = arith.constant 0 : index
      %43 = vector.load %arg5[%c0_24, %c0_25, %c0_26] : memref<1x16x128xf32, #tpu.memory_space<vmem>>, vector<1x16x128xf32>
      tpu.vector_store %arg5[%c0_24, %c0_25, %c0_26], %42 {strides = array<i32>} : memref<1x16x128xf32, #tpu.memory_space<vmem>>, vector<1x16x128xf32>,
    } else {
    }
    return
  }
  func.func @transform_0(%arg0: i32, %arg1: i32) -> (i32, i32) {
    %c1_i32 = arith.constant 1 : i32
    %0 = arith.muli %arg0, %c1_i32 : i32
    %1 = arith.addi %0, %arg1 : i32
    %c0_i32 = arith.constant 0 : i32
    %c0_i32_0 = arith.constant 0 : i32
    return %1, %c0_i32 : i32, i32
  }
  func.func @transform_1(%arg0: i32, %arg1: i32) -> (i32, i32) {
    %c1_i32 = arith.constant 1 : i32
    %0 = arith.muli %arg0, %c1_i32 : i32
    %1 = arith.addi %0, %arg1 : i32
    %c0_i32 = arith.constant 0 : i32
    %c0_i32_0 = arith.constant 0 : i32
    return %1, %c0_i32 : i32, i32
  }
  func.func @transform_2(%arg0: i32, %arg1: i32) -> (i32, i32) {
    %c1_i32 = arith.constant 1 : i32
    %0 = arith.muli %arg0, %c1_i32 : i32
    %1 = arith.addi %0, %arg1 : i32
    %c0_i32 = arith.constant 0 : i32
    %c0_i32_0 = arith.constant 0 : i32
    return %1, %c0_i32 : i32, i32
  }
  func.func @transform_3(%arg0: i32, %arg1: i32) -> (i32, i32, i32) {
    %c0_i32 = arith.constant 0 : i32
    %c0_i32_0 = arith.constant 0 : i32
    %c0_i32_1 = arith.constant 0 : i32
    return %arg0, %c0_i32, %c0_i32_0 : i32, i32, i32
  }
}

</mosaic_0001>

<bundles_post_ra>
// kernel: tpu_custom_call.1
= control target key start
LH: loop header
LB: loop body
LE: loop exit
PB: predicated region body
PF: predicated region fallthrough
CT: control target
= control target key end

     0   :  { %8 = vsyncpa [#allocation5], 0  ;;  %s293_s0 = inlined_call_operand.hbm [shape: f32[2,8], index: 0, kind: input, shape index: {}]   ;;  %s294_s1 = inlined_call_operand.vmem [shape: s32[2,8], index: 1, kind: input, shape index: {}]   ;;  %s295_s2 = inlined_call_operand.vmem [shape: f32[2,8], index: 2, kind: input, shape index: {}]   ;;  %s296_s3 = inlined_call_operand.hbm [shape: f32[1,16,128], index: 3, kind: output, shape index: {}]  }
   0x1   :  { %9 = vsyncpa [#allocation6], 0  ;;  %s227_s12 = smov [#allocation4]   ;;  %s179_s16 = scalar_lea.hbm %s293_s0, 32 }
   0x2   :  { %s19_s13 = sshll.u32 %s227_s12, 4  ;;  %p180_p0 = scmp.ne.s32.totalorder %s293_s0, %s179_s16  ;;  %s20_s13 = int_to_ptr.vmem [resolvable:$true] %s19_s13 }
   0x3   :  { %p183_p1 = scmp.lt.u32.totalorder %s179_s16, %s293_s0 }
   0x5   :  { %p185_p2 = pnand %p183_p1, %p180_p0 }
   0x7   :  { %188 = shalt.err (!%p185_p2)
}
   0x8   :  { %s189_s21 = scalar_lea.vmem %s20_s13, 32  ;;  %p194_p4 = scmp.lt.s32.totalorder %s20_s13, %s20_s13 }
   0x9   :  { %p190_p3 = scmp.ne.s32.totalorder %s20_s13, %s189_s21  ;;  %p195_p5 = scmp.lt.s32.totalorder %s189_s21, %s189_s21 }
   0xb   :  { %p196_p6 = por %p195_p5, %p194_p4 }
   0xd   :  { %p197_p7 = pnand %p196_p6, %p190_p3 }
   0xf   :  { %200 = shalt.err (!%p197_p7)
}
  0x10   :  { %22 = dma.hbm_to_vmem [thread:$0]  %s293_s0, 32, %s20_s13, [#allocation5]  }
  0x11   :  { %223 = dma.done.wait [#allocation5], 32  }
  0x12   :  { %224 = vsyncadd [#allocation5], 4294967264  ;;  %v74_v0 = vld [vmem:[%s294_s1] sm:$0x3]  ;;  %s228_s26 = smov 8   ;;  %vm69_vm0 = vcmask 58368   ;;  %v82_v8 = vlaneseq }
  0x13   :  { %76 = vrot.lane.b32.xlu0 %v74_v0, %s228_s26  ;;  %v229_v1 = vmov 0.0   ;;  %vm75_vm1 = vcmask 1047616   ;;  %v230_v6 = vmov 0   ;;  %s231_s0 = smov 121   ;;  %v72_v10 = vld [vmem:[#allocation4] sm:$0x3] }
  0x14   :  { %70 = vst.msk [vmem:[#allocation2] sm:$0x3] %vm69_vm0, %v229_v1  ;;  %71 = vst.msk [vmem:[#allocation3] sm:$0x3] %vm69_vm0, %v229_v1  ;;  %v83_v9 = vand.u32 127, %v82_v8 }
  0x15   :  { %v73_v11 = vld [vmem:[%s295_s2] sm:$0x3]  ;;  %s232_s2 = smov [#allocation7]  }
  0x16   :  { %vm84_vm3 = vcmp.eq.s32.totalorder %v83_v9, 0  ;;  %v92_v12 = vmul.f32 %v73_v11, %v72_v10  ;;  %s143_s28 = sshll.u32 %s232_s2, 4  ;;  %s144_s28 = int_to_ptr.vmem [resolvable:$true] %s143_s28 }
  0x17   :  { %s201_s4 = scalar_lea.vmem %s144_s28, 256  ;;  %p206_p9 = scmp.lt.s32.totalorder %s144_s28, %s144_s28 }
  0x18   :  { %p202_p8 = scmp.ne.s32.totalorder %s144_s28, %s201_s4  ;;  %p207_p10 = scmp.lt.s32.totalorder %s201_s4, %s201_s4 }
  0x1a   :  { %p208_p11 = por %p207_p10, %p206_p9 }
  0x1b   :  { %v91_v14 = vld [vmem:[#allocation2] sm:$0x3]  ;;  %v97_v15 = vld [vmem:[#allocation3] sm:$0x3] }
  0x1c   :  { %p209_p12 = pnand %p208_p11, %p202_p8 }
  0x85   :  { %v77_v2 = vpop.permute.xlu0 %76 }
  0x86   :  { %v78_v3 = vsel %vm75_vm1, %v77_v2, %v74_v0 }
  0x87   :  { %79 = vrot.lane.b32.xlu0 %v78_v3, %s228_s26 }
  0xf9   :  { %v80_v4 = vpop.permute.xlu0 %79 }
  0xfa   :  { %v81_v5 = vsel %vm75_vm1, %v80_v4, %v74_v0 }
  0xfb   :  { %vm85_vm2 = vcmp.gt.s32.totalorder %v81_v5, 0 }
  0xfc   :  { %v86_v7 = vsel %vm85_vm2, 1, %v230_v6 }
  0xfd   :  { %87 = vrot.lane.b32.xlu1 %v86_v7, %s231_s0 }
 0x16f   :  { %v88_v13 = vpop.permute.xlu1 %87 }
 0x170   :  { %vm89_vm4 = vcmp.ne.s32.totalorder %v88_v13, 0 }
 0x171   :  { %vm90_vm5 = vmor %vm84_vm3, %vm89_vm4 }
 0x172   :  { %v93_v16 = vsel %vm90_vm5, %v92_v12, 0.0  ;;  %v167_v17 = vsel %vm90_vm5, 1.0, %v229_v1 }
 0x173   :  { %v94_v18 = vadd.f32 %v93_v16, %v91_v14  ;;  %v100_v19 = vadd.f32 %v167_v17, %v97_v15 }
 0x175   :  { %96 = vst.msk [vmem:[#allocation2] sm:$0x3] %vm69_vm0, %v94_v18  ;;  %101 = vst.msk [vmem:[#allocation3] sm:$0x3] %vm69_vm0, %v100_v19 }
 0x17c   :  { %v116_v20 = vld [vmem:[#allocation3] sm:$0x3]  ;;  %v105_v21 = vld [vmem:[#allocation2] sm:$0x3] }
 0x17d   :  { %v117_v22 = vsel %vm69_vm0, %v116_v20, 0.0  ;;  %v106_v23 = vsel %vm69_vm0, %v105_v21, 0.0 }
 0x17e   :  { %118 = vadd.xlane.f32.xlu0 %v117_v22  ;;  %107 = vadd.xlane.f32.xlu1 %v106_v23 }
 0x20b   :  { %v119_v24 = vpop.xlane.xlu0 %118  ;;  %v108_v25 = vpop.xlane.xlu1 %107 }
 0x20c   :  { %v120_v26 = vrot.slane %v119_v24, 4  ;;  %v109_v27 = vrot.slane %v108_v25, 4 }
 0x20e   :  { %v121_v28 = vadd.f32 %v120_v26, %v119_v24  ;;  %v110_v29 = vadd.f32 %v109_v27, %v108_v25 }
 0x210   :  { %v122_v30 = vrot.slane %v121_v28, 2  ;;  %v111_v31 = vrot.slane %v110_v29, 2 }
 0x212   :  { %v123_v32 = vadd.f32 %v122_v30, %v121_v28  ;;  %v112_v33 = vadd.f32 %v111_v31, %v110_v29 }
 0x214   :  { %v113_v34 = vrot.slane %v112_v33, 1  ;;  %v124_v35 = vrot.slane %v123_v32, 1 }
 0x216   :  { %v114_v36 = vadd.f32 %v113_v34, %v112_v33  ;;  %v125_v37 = vadd.f32 %v124_v35, %v123_v32 }
 0x218   :  { %168 = vpush %v114_v36 }
 0x219   :  { %170 = vpush %v125_v37 }
 0x249   :  { %s169_s29 = spop %168 }
 0x24a   :  { %v132_v38 = vstv %s169_s29  ;;  %s171_s30 = spop %170 }
 0x24b   :  { %136 = vst [vmem:[#allocation7] sm:$0xff] %v132_v38  ;;  %v133_v39 = vstv %s171_s30 }
 0x24c   :  { %137 = vst [vmem:[#allocation7 + $0x8] sm:$0xff] %v133_v39 }
 0x24d   :  { %212 = shalt.err (!%p209_p12)
}
 0x24e   :  { %s213_s7 = scalar_lea.hbm %s296_s3, 256 }
 0x24f   :  { %p214_p13 = scmp.ne.s32.totalorder %s296_s3, %s213_s7  ;;  %p217_p0 = scmp.lt.u32.totalorder %s213_s7, %s296_s3 }
 0x251   :  { %p219_p1 = pnand %p217_p0, %p214_p13 }
 0x253   :  { %222 = shalt.err (!%p219_p1)
}
 0x254   :  { %s233_s12 = smov 128  }
 0x255   :  { %149 = dma.vmem_to_hbm [thread:$0]  %s144_s28, 256, %s296_s3, [#allocation6], %s233_s12, %s233_s12, %s228_s26  }
 0x256   :  { %225 = dma.done.wait [#allocation6], 256  }
 0x257   :  { %226 = vsyncadd [#allocation6], 4294967040 }
 0x258   :  { %153 = vsyncpa [#allocation5], 1 }
 0x259   :  { %154 = vsyncpa [#allocation6], 1 }

</bundles_post_ra>
